<compile_context>
chip_gen: v6e
topology: v6e:2x2x1
jax: 0.10.0
libtpu: 0.0.40
codegen_flags: <defaults>
</compile_context>

<pallas_src>
import math

import jax
import jax.numpy as jnp
import numpy as np
from jax.experimental import pallas as pl
from jax.experimental.pallas import tpu as pltpu

# Model hyper-parameters (small, consistent with the PyTorch module).
HEADS = 4
D_MODEL = 32
D_K = D_MODEL // HEADS
BATCH = 2
SEQ = 8


def mha_tanh_kernel(x_ref, wqkv_ref, bqkv_ref, wo_ref, bo_ref, out_ref):
    """Single grid step: whole batch, all heads.

    x_ref   : (B*S, 3*D)   concatenated [q | k | v] inputs, batch folded into rows
    wqkv_ref: (3*D, 3*D)   block-diag [Wq*scale, Wk, Wv] (head-major columns)
    bqkv_ref: (1, 3*D)     [bq*scale | bk | bv]
    wo_ref  : (D, D)       output projection
    bo_ref  : (1, D)
    out_ref : (B*S, D)
    """
    x = x_ref[...]
    w = wqkv_ref[...]
    b = bqkv_ref[...]
    wo = wo_ref[...]
    bo = bo_ref[...]

    # Fused Q/K/V projection: ONE lane-dense MXU push; scale already folded in.
    qkv = jnp.dot(x, w, preferred_element_type=jnp.float32) + b      # (B*S, 3D)
    # Split rows back into (B, S, 3D): clean 8-aligned sublane split.
    qkv3 = qkv.reshape(BATCH, SEQ, 3 * D_MODEL)

    # TODO(synk): training-time dropout on the scores, the mask path, and
    # exposing raw scores (get_scores) are not implemented (eval-mode forward).
    out = jnp.zeros((BATCH * SEQ, D_MODEL), jnp.float32)
    for h in range(HEADS):  # static unroll; d_k=8 heads are tiny
        q_h = qkv3[:, :, h * D_K:(h + 1) * D_K]                      # (B, S, d_k)
        k_h = qkv3[:, :, D_MODEL + h * D_K:D_MODEL + (h + 1) * D_K]
        v_h = qkv3[:, :, 2 * D_MODEL + h * D_K:2 * D_MODEL + (h + 1) * D_K]

        # tanh "scores" (no softmax); already scaled by 1/sqrt(d_k) via Wq.
        s_h = jnp.tanh(jnp.einsum("bqd,bkd->bqk", q_h, k_h,
                                  preferred_element_type=jnp.float32))
        o_h = jnp.einsum("bqk,bkd->bqd", s_h, v_h,
                         preferred_element_type=jnp.float32)         # (B, S, d_k)

        # Fused head-concat + output projection: accumulate o_h @ Wo[rows of h].
        out = out + jnp.dot(o_h.reshape(BATCH * SEQ, D_K),
                            wo[h * D_K:(h + 1) * D_K, :],
                            preferred_element_type=jnp.float32)

    out_ref[...] = (out + bo).astype(out_ref.dtype)


def _pack_params(params):
    """Host-side, one-time packing.

    Returns:
      w_big: (3*D, 3*D) block-diagonal [Wq*scale, Wk, Wv] (lane-dense)
      b_big: (1, 3*D)   [bq*scale | bk | bv]
    """
    scale = 1.0 / math.sqrt(D_K)
    D = D_MODEL
    w_big = jnp.zeros((3 * D, 3 * D), jnp.float32)
    w_big = w_big.at[0:D, 0:D].set(params["wq"] * scale)
    w_big = w_big.at[D:2 * D, D:2 * D].set(params["wk"])
    w_big = w_big.at[2 * D:3 * D, 2 * D:3 * D].set(params["wv"])
    b_big = jnp.concatenate(
        [params["bq"] * scale, params["bk"], params["bv"]], axis=-1)  # (1, 3*D)
    return w_big, b_big


def multi_head_attention_tanh(q, k, v, params):
    """q, k, v: [B, S, D] float32. params: dict of weights/biases. Returns [B, S, D]."""
    B, S, D = q.shape
    w_big, b_big = _pack_params(params)
    # Lane-dense activation slab: (B*S, 3*D) = (16, 96).
    x_cat = jnp.concatenate([q, k, v], axis=-1).reshape(B * S, 3 * D)

    out = pl.pallas_call(
        mha_tanh_kernel,
        out_shape=jax.ShapeDtypeStruct((B * S, D), jnp.float32),
        grid_spec=pltpu.PrefetchScalarGridSpec(
            num_scalar_prefetch=0,
            grid=(1,),  # collapsed: whole problem in one step (overhead-bound regime)
            in_specs=[
                pl.BlockSpec((B * S, 3 * D), lambda i: (0, 0)),   # q|k|v rows
                pl.BlockSpec((3 * D, 3 * D), lambda i: (0, 0)),   # W_qkv (block-diag)
                pl.BlockSpec((1, 3 * D), lambda i: (0, 0)),       # b_qkv
                pl.BlockSpec((D, D), lambda i: (0, 0)),           # W_out
                pl.BlockSpec((1, D), lambda i: (0, 0)),           # b_out
            ],
            out_specs=pl.BlockSpec((B * S, D), lambda i: (0, 0)),
        ),
    )(x_cat, w_big, b_big, params["wo"], params["bo"])
    return out.reshape(B, S, D)


def reference_mha_tanh(q, k, v, params):
    """Plain-JAX reference matching the PyTorch forward (mask=None, eval)."""
    B, S, D = q.shape

    def proj(x, w, b):
        return x @ w + b  # (B, S, D)

    qp = proj(q, params["wq"], params["bq"]).reshape(B, S, HEADS, D_K).transpose(0, 2, 1, 3)
    kp = proj(k, params["wk"], params["bk"]).reshape(B, S, HEADS, D_K).transpose(0, 2, 1, 3)
    vp = proj(v, params["wv"], params["bv"]).reshape(B, S, HEADS, D_K).transpose(0, 2, 1, 3)
    scores = jnp.einsum("bhqd,bhkd->bhqk", qp, kp) / math.sqrt(D_K)
    scores = jnp.tanh(scores)
    out = jnp.einsum("bhqk,bhkd->bhqd", scores, vp)
    concat = out.transpose(0, 2, 1, 3).reshape(B, S, D)
    return concat @ params["wo"] + params["bo"]


def init_params(key):
    """Deterministic init; weights stored as [D_in, D_out], biases [1, D_out]."""
    ks = jax.random.split(key, 8)
    bound = 1.0 / math.sqrt(D_MODEL)

    def lin(kw, kb):
        w = jax.random.uniform(kw, (D_MODEL, D_MODEL), jnp.float32, -bound, bound)
        b = jax.random.uniform(kb, (1, D_MODEL), jnp.float32, -bound, bound)
        return w, b

    wq, bq = lin(ks[0], ks[1])
    wk, bk = lin(ks[2], ks[3])
    wv, bv = lin(ks[4], ks[5])
    wo, bo = lin(ks[6], ks[7])
    return {"wq": wq, "bq": bq, "wk": wk, "bk": bk,
            "wv": wv, "bv": bv, "wo": wo, "bo": bo}


if __name__ == "__main__":
    key = jax.random.PRNGKey(0)
    kq, kk, kv, kp = jax.random.split(key, 4)

    q = jax.random.normal(kq, (BATCH, SEQ, D_MODEL), jnp.float32)
    k = jax.random.normal(kk, (BATCH, SEQ, D_MODEL), jnp.float32)
    v = jax.random.normal(kv, (BATCH, SEQ, D_MODEL), jnp.float32)
    params = init_params(kp)

    out = multi_head_attention_tanh(q, k, v, params)
    out = jax.block_until_ready(out)

    ref = jax.block_until_ready(reference_mha_tanh(q, k, v, params))
    np.testing.assert_allclose(np.asarray(out), np.asarray(ref),
                               rtol=1e-5, atol=1e-5)

    print("KERNEL_OK")
</pallas_src>

<mosaic_0001>
module attributes {stable_mosaic.version = 11 : i64} {
  func.func @mha_tanh_kernel(%arg0: i32, %arg1: memref<16x96xf32, #tpu.memory_space<vmem>>, %arg2: memref<96x96xf32, #tpu.memory_space<vmem>>, %arg3: memref<1x96xf32, #tpu.memory_space<vmem>>, %arg4: memref<32x32xf32, #tpu.memory_space<vmem>>, %arg5: memref<1x32xf32, #tpu.memory_space<vmem>>, %arg6: memref<16x32xf32, #tpu.memory_space<vmem>>) attributes {dimension_semantics = [#tpu.dimension_semantics<arbitrary>], iteration_bounds = array<i64: 1>, scalar_prefetch = 0 : i64, scratch_operands = 0 : i64, tpu.core_type = #tpu.core_type<tc>, window_params = [{pipeline_mode = #tpu.pipeline_mode<synchronous>, transform_indices = @transform_0, window_bounds = array<i64: 16, 96>}, {pipeline_mode = #tpu.pipeline_mode<synchronous>, transform_indices = @transform_1, window_bounds = array<i64: 96, 96>}, {pipeline_mode = #tpu.pipeline_mode<synchronous>, transform_indices = @transform_2, window_bounds = array<i64: 1, 96>}, {pipeline_mode = #tpu.pipeline_mode<synchronous>, transform_indices = @transform_3, window_bounds = array<i64: 32, 32>}, {pipeline_mode = #tpu.pipeline_mode<synchronous>, transform_indices = @transform_4, window_bounds = array<i64: 1, 32>}, {pipeline_mode = #tpu.pipeline_mode<synchronous>, transform_indices = @transform_5, window_bounds = array<i64: 16, 32>}]} {
    %c0 = arith.constant 0 : index
    %c0_0 = arith.constant 0 : index
    %0 = vector.load %arg1[%c0, %c0_0] : memref<16x96xf32, #tpu.memory_space<vmem>>, vector<16x96xf32>
    %c0_1 = arith.constant 0 : index
    %c0_2 = arith.constant 0 : index
    %1 = vector.load %arg2[%c0_1, %c0_2] : memref<96x96xf32, #tpu.memory_space<vmem>>, vector<96x96xf32>
    %c0_3 = arith.constant 0 : index
    %c0_4 = arith.constant 0 : index
    %2 = vector.load %arg3[%c0_3, %c0_4] : memref<1x96xf32, #tpu.memory_space<vmem>>, vector<1x96xf32>
    %c0_5 = arith.constant 0 : index
    %c0_6 = arith.constant 0 : index
    %3 = vector.load %arg4[%c0_5, %c0_6] : memref<32x32xf32, #tpu.memory_space<vmem>>, vector<32x32xf32>
    %c0_7 = arith.constant 0 : index
    %c0_8 = arith.constant 0 : index
    %4 = vector.load %arg5[%c0_7, %c0_8] : memref<1x32xf32, #tpu.memory_space<vmem>>, vector<1x32xf32>
    %cst = arith.constant dense<0.000000e+00> : vector<16x96xf32>
    %5 = tpu.matmul %0, %1, %cst {dimension_numbers = #tpu.dot_dimension_numbers<[1], [0], [0], [1], [0, 0, 1, 1], [], []>} : vector<16x96xf32>, vector<96x96xf32>, vector<16x96xf32> -> vector<16x96xf32>
    %6 = vector.broadcast %2 : vector<1x96xf32> to vector<16x96xf32>
    %7 = arith.addf %5, %6 : vector<16x96xf32>
    %8 = vector.shape_cast %7 : vector<16x96xf32> to vector<2x8x96xf32>
    %cst_9 = arith.constant 0.000000e+00 : f32
    %9 = vector.broadcast %cst_9 : f32 to vector<16x32xf32>
    %10 = vector.extract_strided_slice %8 {offsets = [0, 0, 0], sizes = [2, 8, 8], strides = [1, 1, 1]} : vector<2x8x96xf32> to vector<2x8x8xf32>
    %11 = vector.extract_strided_slice %8 {offsets = [0, 0, 32], sizes = [2, 8, 8], strides = [1, 1, 1]} : vector<2x8x96xf32> to vector<2x8x8xf32>
    %12 = vector.extract_strided_slice %8 {offsets = [0, 0, 64], sizes = [2, 8, 8], strides = [1, 1, 1]} : vector<2x8x96xf32> to vector<2x8x8xf32>
    "tpu.trace_start"() <{level = 10 : i32, message = "bqd,bkd->bqk"}> : () -> ()
    %cst_10 = arith.constant dense<0.000000e+00> : vector<2x8x8xf32>
    %13 = tpu.matmul %10, %11, %cst_10 {dimension_numbers = #tpu.dot_dimension_numbers<[2], [2], [1], [1], [0, 0, 0, 1, 1, 1], [0], [0]>} : vector<2x8x8xf32>, vector<2x8x8xf32>, vector<2x8x8xf32> -> vector<2x8x8xf32>
    "tpu.trace_stop"() : () -> ()
    %14 = math.tanh %13 : vector<2x8x8xf32>
    "tpu.trace_start"() <{level = 10 : i32, message = "bqk,bkd->bqd"}> : () -> ()
    %cst_11 = arith.constant dense<0.000000e+00> : vector<2x8x8xf32>
    %15 = tpu.matmul %14, %12, %cst_11 {dimension_numbers = #tpu.dot_dimension_numbers<[2], [1], [1], [2], [0, 0, 0, 1, 1, 2], [0], [0]>} : vector<2x8x8xf32>, vector<2x8x8xf32>, vector<2x8x8xf32> -> vector<2x8x8xf32>
    "tpu.trace_stop"() : () -> ()
    %16 = vector.shape_cast %15 : vector<2x8x8xf32> to vector<16x8xf32>
    %17 = vector.extract_strided_slice %3 {offsets = [0, 0], sizes = [8, 32], strides = [1, 1]} : vector<32x32xf32> to vector<8x32xf32>
    %cst_12 = arith.constant dense<0.000000e+00> : vector<16x32xf32>
    %18 = tpu.matmul %16, %17, %cst_12 {dimension_numbers = #tpu.dot_dimension_numbers<[1], [0], [0], [1], [0, 0, 1, 1], [], []>} : vector<16x8xf32>, vector<8x32xf32>, vector<16x32xf32> -> vector<16x32xf32>
    %19 = arith.addf %9, %18 : vector<16x32xf32>
    %20 = vector.extract_strided_slice %8 {offsets = [0, 0, 8], sizes = [2, 8, 8], strides = [1, 1, 1]} : vector<2x8x96xf32> to vector<2x8x8xf32>
    %21 = vector.extract_strided_slice %8 {offsets = [0, 0, 40], sizes = [2, 8, 8], strides = [1, 1, 1]} : vector<2x8x96xf32> to vector<2x8x8xf32>
    %22 = vector.extract_strided_slice %8 {offsets = [0, 0, 72], sizes = [2, 8, 8], strides = [1, 1, 1]} : vector<2x8x96xf32> to vector<2x8x8xf32>
    "tpu.trace_start"() <{level = 10 : i32, message = "bqd,bkd->bqk"}> : () -> ()
    %cst_13 = arith.constant dense<0.000000e+00> : vector<2x8x8xf32>
    %23 = tpu.matmul %20, %21, %cst_13 {dimension_numbers = #tpu.dot_dimension_numbers<[2], [2], [1], [1], [0, 0, 0, 1, 1, 1], [0], [0]>} : vector<2x8x8xf32>, vector<2x8x8xf32>, vector<2x8x8xf32> -> vector<2x8x8xf32>
    "tpu.trace_stop"() : () -> ()
    %24 = math.tanh %23 : vector<2x8x8xf32>
    "tpu.trace_start"() <{level = 10 : i32, message = "bqk,bkd->bqd"}> : () -> ()
    %cst_14 = arith.constant dense<0.000000e+00> : vector<2x8x8xf32>
    %25 = tpu.matmul %24, %22, %cst_14 {dimension_numbers = #tpu.dot_dimension_numbers<[2], [1], [1], [2], [0, 0, 0, 1, 1, 2], [0], [0]>} : vector<2x8x8xf32>, vector<2x8x8xf32>, vector<2x8x8xf32> -> vector<2x8x8xf32>
    "tpu.trace_stop"() : () -> ()
    %26 = vector.shape_cast %25 : vector<2x8x8xf32> to vector<16x8xf32>
    %27 = vector.extract_strided_slice %3 {offsets = [8, 0], sizes = [8, 32], strides = [1, 1]} : vector<32x32xf32> to vector<8x32xf32>
    %cst_15 = arith.constant dense<0.000000e+00> : vector<16x32xf32>
    %28 = tpu.matmul %26, %27, %cst_15 {dimension_numbers = #tpu.dot_dimension_numbers<[1], [0], [0], [1], [0, 0, 1, 1], [], []>} : vector<16x8xf32>, vector<8x32xf32>, vector<16x32xf32> -> vector<16x32xf32>
    %29 = arith.addf %19, %28 : vector<16x32xf32>
    %30 = vector.extract_strided_slice %8 {offsets = [0, 0, 16], sizes = [2, 8, 8], strides = [1, 1, 1]} : vector<2x8x96xf32> to vector<2x8x8xf32>
    %31 = vector.extract_strided_slice %8 {offsets = [0, 0, 48], sizes = [2, 8, 8], strides = [1, 1, 1]} : vector<2x8x96xf32> to vector<2x8x8xf32>
    %32 = vector.extract_strided_slice %8 {offsets = [0, 0, 80], sizes = [2, 8, 8], strides = [1, 1, 1]} : vector<2x8x96xf32> to vector<2x8x8xf32>
    "tpu.trace_start"() <{level = 10 : i32, message = "bqd,bkd->bqk"}> : () -> ()
    %cst_16 = arith.constant dense<0.000000e+00> : vector<2x8x8xf32>
    %33 = tpu.matmul %30, %31, %cst_16 {dimension_numbers = #tpu.dot_dimension_numbers<[2], [2], [1], [1], [0, 0, 0, 1, 1, 1], [0], [0]>} : vector<2x8x8xf32>, vector<2x8x8xf32>, vector<2x8x8xf32> -> vector<2x8x8xf32>
    "tpu.trace_stop"() : () -> ()
    %34 = math.tanh %33 : vector<2x8x8xf32>
    "tpu.trace_start"() <{level = 10 : i32, message = "bqk,bkd->bqd"}> : () -> ()
    %cst_17 = arith.constant dense<0.000000e+00> : vector<2x8x8xf32>
    %35 = tpu.matmul %34, %32, %cst_17 {dimension_numbers = #tpu.dot_dimension_numbers<[2], [1], [1], [2], [0, 0, 0, 1, 1, 2], [0], [0]>} : vector<2x8x8xf32>, vector<2x8x8xf32>, vector<2x8x8xf32> -> vector<2x8x8xf32>
    "tpu.trace_stop"() : () -> ()
    %36 = vector.shape_cast %35 : vector<2x8x8xf32> to vector<16x8xf32>
    %37 = vector.extract_strided_slice %3 {offsets = [16, 0], sizes = [8, 32], strides = [1, 1]} : vector<32x32xf32> to vector<8x32xf32>
    %cst_18 = arith.constant dense<0.000000e+00> : vector<16x32xf32>
    %38 = tpu.matmul %36, %37, %cst_18 {dimension_numbers = #tpu.dot_dimension_numbers<[1], [0], [0], [1], [0, 0, 1, 1], [], []>} : vector<16x8xf32>, vector<8x32xf32>, vector<16x32xf32> -> vector<16x32xf32>
    %39 = arith.addf %29, %38 : vector<16x32xf32>
    %40 = vector.extract_strided_slice %8 {offsets = [0, 0, 24], sizes = [2, 8, 8], strides = [1, 1, 1]} : vector<2x8x96xf32> to vector<2x8x8xf32>
    %41 = vector.extract_strided_slice %8 {offsets = [0, 0, 56], sizes = [2, 8, 8], strides = [1, 1, 1]} : vector<2x8x96xf32> to vector<2x8x8xf32>
    %42 = vector.extract_strided_slice %8 {offsets = [0, 0, 88], sizes = [2, 8, 8], strides = [1, 1, 1]} : vector<2x8x96xf32> to vector<2x8x8xf32>
    "tpu.trace_start"() <{level = 10 : i32, message = "bqd,bkd->bqk"}> : () -> ()
    %cst_19 = arith.constant dense<0.000000e+00> : vector<2x8x8xf32>
    %43 = tpu.matmul %40, %41, %cst_19 {dimension_numbers = #tpu.dot_dimension_numbers<[2], [2], [1], [1], [0, 0, 0, 1, 1, 1], [0], [0]>} : vector<2x8x8xf32>, vector<2x8x8xf32>, vector<2x8x8xf32> -> vector<2x8x8xf32>
    "tpu.trace_stop"() : () -> ()
    %44 = math.tanh %43 : vector<2x8x8xf32>
    "tpu.trace_start"() <{level = 10 : i32, message = "bqk,bkd->bqd"}> : () -> ()
    %cst_20 = arith.constant dense<0.000000e+00> : vector<2x8x8xf32>
    %45 = tpu.matmul %44, %42, %cst_20 {dimension_numbers = #tpu.dot_dimension_numbers<[2], [1], [1], [2], [0, 0, 0, 1, 1, 2], [0], [0]>} : vector<2x8x8xf32>, vector<2x8x8xf32>, vector<2x8x8xf32> -> vector<2x8x8xf32>
    "tpu.trace_stop"() : () -> ()
    %46 = vector.shape_cast %45 : vector<2x8x8xf32> to vector<16x8xf32>
    %47 = vector.extract_strided_slice %3 {offsets = [24, 0], sizes = [8, 32], strides = [1, 1]} : vector<32x32xf32> to vector<8x32xf32>
    %cst_21 = arith.constant dense<0.000000e+00> : vector<16x32xf32>
    %48 = tpu.matmul %46, %47, %cst_21 {dimension_numbers = #tpu.dot_dimension_numbers<[1], [0], [0], [1], [0, 0, 1, 1], [], []>} : vector<16x8xf32>, vector<8x32xf32>, vector<16x32xf32> -> vector<16x32xf32>
    %49 = arith.addf %39, %48 : vector<16x32xf32>
    %50 = vector.broadcast %4 : vector<1x32xf32> to vector<16x32xf32>
    %51 = arith.addf %49, %50 : vector<16x32xf32>
    %c0_22 = arith.constant 0 : index
    %c0_23 = arith.constant 0 : index
    %52 = vector.load %arg6[%c0_22, %c0_23] : memref<16x32xf32, #tpu.memory_space<vmem>>, vector<16x32xf32>
    tpu.vector_store %arg6[%c0_22, %c0_23], %51 {strides = array<i32>} : memref<16x32xf32, #tpu.memory_space<vmem>>, vector<16x32xf32>,
    return
  }
  func.func @transform_0(%arg0: i32) -> (i32, i32) {
    %c0_i32 = arith.constant 0 : i32
    %c0_i32_0 = arith.constant 0 : i32
    %c0_i32_1 = arith.constant 0 : i32
    return %c0_i32, %c0_i32_0 : i32, i32
  }
  func.func @transform_1(%arg0: i32) -> (i32, i32) {
    %c0_i32 = arith.constant 0 : i32
    %c0_i32_0 = arith.constant 0 : i32
    %c0_i32_1 = arith.constant 0 : i32
    return %c0_i32, %c0_i32_0 : i32, i32
  }
  func.func @transform_2(%arg0: i32) -> (i32, i32) {
    %c0_i32 = arith.constant 0 : i32
    %c0_i32_0 = arith.constant 0 : i32
    %c0_i32_1 = arith.constant 0 : i32
    return %c0_i32, %c0_i32_0 : i32, i32
  }
  func.func @transform_3(%arg0: i32) -> (i32, i32) {
    %c0_i32 = arith.constant 0 : i32
    %c0_i32_0 = arith.constant 0 : i32
    %c0_i32_1 = arith.constant 0 : i32
    return %c0_i32, %c0_i32_0 : i32, i32
  }
  func.func @transform_4(%arg0: i32) -> (i32, i32) {
    %c0_i32 = arith.constant 0 : i32
    %c0_i32_0 = arith.constant 0 : i32
    %c0_i32_1 = arith.constant 0 : i32
    return %c0_i32, %c0_i32_0 : i32, i32
  }
  func.func @transform_5(%arg0: i32) -> (i32, i32) {
    %c0_i32 = arith.constant 0 : i32
    %c0_i32_0 = arith.constant 0 : i32
    %c0_i32_1 = arith.constant 0 : i32
    return %c0_i32, %c0_i32_0 : i32, i32
  }
}

</mosaic_0001>

<bundles_post_ra>
// kernel: tpu_custom_call.1
= control target key start
LH: loop header
LB: loop body
LE: loop exit
PB: predicated region body
PF: predicated region fallthrough
CT: control target
= control target key end

     0   :  { %10 = vsyncpa [#allocation3], 0  ;;  %s2269_s0 = inlined_call_operand.hbm [shape: f32[16,96], index: 0, kind: input, shape index: {}]   ;;  %s2270_s1 = inlined_call_operand.hbm [shape: f32[96,96], index: 1, kind: input, shape index: {}]   ;;  %s2271_s2 = inlined_call_operand.vmem [shape: f32[1,96], index: 2, kind: input, shape index: {}]   ;;  %s2272_s3 = inlined_call_operand.hbm [shape: f32[32,32], index: 3, kind: input, shape index: {}]   ;;  %s2273_s4 = inlined_call_operand.vmem [shape: f32[1,32], index: 4, kind: input, shape index: {}]   ;;  %s2274_s5 = inlined_call_operand.hbm [shape: f32[16,32], index: 5, kind: output, shape index: {}]  }
   0x1   :  { %11 = vsyncpa [#allocation6], 0 }
   0x2   :  { %12 = vsyncpa [#allocation4], 0  ;;  %s2108_s18 = smov [#allocation5]   ;;  %s2109_s20 = smov [#allocation2]  }
   0x3   :  { %s30_s19 = sshll.u32 %s2108_s18, 4  ;;  %s18_s21 = sshll.u32 %s2109_s20, 4  ;;  %s31_s19 = int_to_ptr.vmem [resolvable:$true] %s30_s19  ;;  %s19_s21 = int_to_ptr.vmem [resolvable:$true] %s18_s21 }
   0x4   :  { %s2030_s22 = scalar_lea.vmem %s31_s19, 1536  ;;  %p2035_p1 = scmp.lt.s32.totalorder %s31_s19, %s31_s19 }
   0x5   :  { %p2031_p0 = scmp.ne.s32.totalorder %s31_s19, %s2030_s22  ;;  %p2036_p2 = scmp.lt.s32.totalorder %s2030_s22, %s2030_s22 }
   0x7   :  { %p2037_p3 = por %p2036_p2, %p2035_p1 }
   0x9   :  { %p2038_p4 = pnand %p2037_p3, %p2031_p0 }
   0xb   :  { %2041 = shalt.err (!%p2038_p4)
}
   0xc   :  { %s2110_s23 = smov 128   ;;  %s2111_s24 = smov 8  }
   0xd   :  { %36 = dma.hbm_to_vmem [thread:$0]  %s2270_s1, 1536, %s31_s19, [#allocation6], %s2110_s23, %s2110_s23, %s2111_s24  }
   0xe   :  { %s2050_s27 = scalar_lea.vmem %s19_s21, 256  ;;  %p2055_p6 = scmp.lt.s32.totalorder %s19_s21, %s19_s21 }
   0xf   :  { %p2051_p5 = scmp.ne.s32.totalorder %s19_s21, %s2050_s27  ;;  %p2056_p7 = scmp.lt.s32.totalorder %s2050_s27, %s2050_s27 }
  0x11   :  { %p2057_p8 = por %p2056_p7, %p2055_p6 }
  0x13   :  { %p2058_p9 = pnand %p2057_p8, %p2051_p5 }
  0x15   :  { %2061 = shalt.err (!%p2058_p9)
}
  0x16   :  { %24 = dma.hbm_to_vmem [thread:$0]  %s2269_s0, 256, %s19_s21, [#allocation3], %s2110_s23, %s2110_s23, %s2111_s24  }
  0x17   :  { %s2112_s30 = smov [#allocation7]  }
  0x18   :  { %s44_s6 = sshll.u32 %s2112_s30, 4  ;;  %s45_s6 = int_to_ptr.vmem [resolvable:$true] %s44_s6 }
  0x19   :  { %s2070_s7 = scalar_lea.vmem %s45_s6, 512  ;;  %p2075_p11 = scmp.lt.s32.totalorder %s45_s6, %s45_s6 }
  0x1a   :  { %p2071_p10 = scmp.ne.s32.totalorder %s45_s6, %s2070_s7  ;;  %p2076_p12 = scmp.lt.s32.totalorder %s2070_s7, %s2070_s7 }
  0x1c   :  { %p2077_p13 = por %p2076_p12, %p2075_p11 }
  0x1e   :  { %p2078_p0 = pnand %p2077_p13, %p2071_p10 }
  0x20   :  { %2081 = shalt.err (!%p2078_p0)
}
  0x21   :  { %50 = dma.hbm_to_vmem [thread:$0]  %s2272_s3, 512, %s45_s6, [#allocation6], %s2110_s23, %s2110_s23, %s2111_s24  }
  0x22   :  { %2102 = dma.done.wait [#allocation3], 256  }
  0x23   :  { %2103 = vsyncadd [#allocation3], 4294967040 }
  0x24   :  { %2104 = dma.done.wait [#allocation6], 2048  }
  0x25   :  { %2105 = vsyncadd [#allocation6], 4294965248  ;;  %v75_v0 = vld [vmem:[#allocation5 + $0x58] sm:$0xff]  ;;  %v74_v1 = vld [vmem:[#allocation5 + $0x50] sm:$0xff]  ;;  %vm88_vm0 = vcmask 785408   ;;  %v2113_v14 = vmov 0.0  }
  0x26   :  { %1860 = vmatprep.subr.mxu0 %v75_v0  ;;  %v73_v2 = vld [vmem:[#allocation5 + $0x48] sm:$0xff]  ;;  %v72_v3 = vld [vmem:[#allocation5 + $0x40] sm:$0xff]  ;;  %v62_v4 = vld [vmem:[#allocation2] sm:$0xff]  ;;  %1887 = vmatprep.subr.mxu1 %v2113_v14  ;;  %vm2114_vm1 = vmmov 0   ;;  %s2115_s9 = smov 64   ;;  %s2116_s10 = smov 96  }
  0x27   :  { %1861 = vmatpush3.msra.mxu0 %v75_v0  ;;  %1884 = vmatprep.mubr.msk.f32.mxu0 %vm88_vm0, %v62_v4  ;;  %v71_v5 = vld [vmem:[#allocation5 + $0x38] sm:$0xff]  ;;  %v70_v6 = vld [vmem:[#allocation5 + $0x30] sm:$0xff]  ;;  %v69_v7 = vld [vmem:[#allocation5 + $0x28] sm:$0xff]  ;;  %s2117_s11 = smov 120   ;;  %s2118_s12 = smov 88   ;;  %vm173_vm2 = vcmask 64512  }
  0x28   :  { %1862 = vmatprep.subr.mxu0 %v74_v1  ;;  %v68_v8 = vld [vmem:[#allocation5 + $0x20] sm:$0xff]  ;;  %v67_v9 = vld [vmem:[#allocation5 + $0x18] sm:$0xff]  ;;  %v66_v10 = vld [vmem:[#allocation5 + $0x10] sm:$0xff]  ;;  %1889 = vmatprep.mubr.msk.f32.mxu1 %vm2114_vm1, %v2113_v14  ;;  %s2119_s13 = smov 56   ;;  %s2120_s14 = smov 80   ;;  %vm1745_vm3 = vcmask 261120  }
  0x29   :  { %1863 = vmatpush3.msra.mxu0 %v74_v1  ;;  %v65_v11 = vld [vmem:[#allocation5 + $0x8] sm:$0xff]  ;;  %v64_v12 = vld [vmem:[#allocation5] sm:$0xff]  ;;  %v63_v13 = vld [vmem:[#allocation2 + $0x8] sm:$0xff]  ;;  %s2122_s15 = smov 48   ;;  %s2123_s16 = smov 72  }
  0x2a   :  { %1864 = vmatprep.subr.mxu0 %v73_v2  ;;  %v1766_v16 = vld [vmem:[%s2271_s2] ss:$0 sm:$0xff]  ;;  %s2121_s2 = smov 112   ;;  %s2124_s17 = smov 104   ;;  %v77_v36 = vld [vmem:[#allocation7] sm:$0xff]  ;;  %v78_v50 = vld [vmem:[#allocation7 + $0x8] sm:$0xff] }
  0x2b   :  { %1865 = vmatpush3.msra.mxu0 %v73_v2  ;;  %s2125_s18 = smov 40   ;;  %v79_v2 = vld [vmem:[#allocation7 + $0x10] sm:$0xff]  ;;  %s2126_s21 = smov [#allocation8]  }
  0x2c   :  { %1866 = vmatprep.subr.mxu0 %v72_v3  ;;  %s1753_s22 = sshll.u32 %s2126_s21, 4  ;;  %s1754_s22 = int_to_ptr.vmem [resolvable:$true] %s1753_s22 }
  0x2d   :  { %1867 = vmatpush3.msra.mxu0 %v72_v3  ;;  %s2082_s25 = scalar_lea.vmem %s1754_s22, 256  ;;  %p2087_p2 = scmp.lt.s32.totalorder %s1754_s22, %s1754_s22 }
  0x2e   :  { %1868 = vmatprep.subr.mxu0 %v71_v5  ;;  %p2083_p1 = scmp.ne.s32.totalorder %s1754_s22, %s2082_s25  ;;  %p2088_p3 = scmp.lt.s32.totalorder %s2082_s25, %s2082_s25 }
  0x2f   :  { %1869 = vmatpush3.msra.mxu0 %v71_v5 }
  0x30   :  { %1870 = vmatprep.subr.mxu0 %v70_v6  ;;  %p2089_p4 = por %p2088_p3, %p2087_p2 }
  0x31   :  { %1871 = vmatpush3.msra.mxu0 %v70_v6 }
  0x32   :  { %1872 = vmatprep.subr.mxu0 %v69_v7  ;;  %p2090_p5 = pnand %p2089_p4, %p2083_p1 }
  0x33   :  { %1873 = vmatpush3.msra.mxu0 %v69_v7 }
  0x34   :  { %1874 = vmatprep.subr.mxu0 %v68_v8 }
  0x35   :  { %1875 = vmatpush3.msra.mxu0 %v68_v8 }
  0x36   :  { %1876 = vmatprep.subr.mxu0 %v67_v9 }
  0x37   :  { %1877 = vmatpush3.msra.mxu0 %v67_v9 }
  0x38   :  { %1878 = vmatprep.subr.mxu0 %v66_v10 }
  0x39   :  { %1879 = vmatpush3.msra.mxu0 %v66_v10 }
  0x3a   :  { %1880 = vmatprep.subr.mxu0 %v65_v11 }
  0x3b   :  { %1881 = vmatpush3.msra.mxu0 %v65_v11 }
  0x3c   :  { %1882 = vmatprep.subr.mxu0 %v64_v12 }
  0x3d   :  { %1883 = vmatpush3.msra.mxu0 %v64_v12 }
  0x3e   :  { %1885 = vmatmul.mubr.msk.f32.vlgmr.msra.gmra.mxu0 %vm88_vm0, %v63_v13  ;;  %1917 = vmatprep.subr.mxu0 %v2113_v14 }
  0x3f   :  { %1919 = vmatprep.mubr.msk.f32.mxu0 %vm2114_vm1, %v2113_v14 }
  0xfe   :  { %v1886_v15 = vpop.f32.mrf.mxu0 }
  0xff   :  { %v167_v19 = vadd.f32 %v1886_v15, %v1766_v16 }
 0x100   :  { %v161_v17 = vpop.f32.mrf.mxu0 }
 0x101   :  { %v162_v18 = vadd.f32 %v1766_v16, %v161_v17 }
 0x103   :  { %327 = vrot.lane.b32.xlu1 %v162_v18, %s2115_s9  ;;  %171 = vrot.lane.b32.xlu0 %v162_v18, %s2116_s10 }
 0x107   :  { %403 = vrot.lane.b32.xlu1 %v167_v19, %s2115_s9  ;;  %249 = vrot.lane.b32.xlu0 %v167_v19, %s2116_s10 }
 0x10b   :  { %479 = vrot.lane.b32.xlu1 %v162_v18, %s2117_s11  ;;  %481 = vrot.lane.b32.xlu0 %v162_v18, %s2118_s12 }
 0x10f   :  { %557 = vrot.lane.b32.xlu1 %v167_v19, %s2117_s11  ;;  %559 = vrot.lane.b32.xlu0 %v167_v19, %s2118_s12 }
 0x113   :  { %713 = vrot.lane.b32.xlu1 %v167_v19, %s2119_s13  ;;  %637 = vrot.lane.b32.xlu0 %v162_v18, %s2119_s13 }
 0x117   :  { %1031 = vrot.lane.b32.xlu1 %v167_v19, %s2120_s14  ;;  %953 = vrot.lane.b32.xlu0 %v162_v18, %s2120_s14 }
 0x11b   :  { %1029 = vrot.lane.b32.xlu1 %v167_v19, %s2121_s2  ;;  %951 = vrot.lane.b32.xlu0 %v162_v18, %s2121_s2 }
 0x11f   :  { %1185 = vrot.lane.b32.xlu1 %v167_v19, %s2122_s15  ;;  %1109 = vrot.lane.b32.xlu0 %v162_v18, %s2122_s15 }
 0x123   :  { %1424 = vrot.lane.b32.xlu1 %v167_v19, %s2123_s16  ;;  %1346 = vrot.lane.b32.xlu0 %v162_v18, %s2123_s16 }
 0x127   :  { %1422 = vrot.lane.b32.xlu1 %v167_v19, %s2124_s17  ;;  %1344 = vrot.lane.b32.xlu0 %v162_v18, %s2124_s17 }
 0x12b   :  { %1578 = vrot.lane.b32.xlu1 %v167_v19, %s2125_s18  ;;  %1502 = vrot.lane.b32.xlu0 %v162_v18, %s2125_s18 }
 0x175   :  { %v172_v20 = vpop.permute.xlu0 %171  ;;  %v328_v22 = vpop.permute.xlu1 %327 }
 0x176   :  { %1888 = vmatpush3.xpose.msk.msra.mxu1 %vm173_vm2, %v172_v20 }
 0x177   :  { %1892 = vmatprep.subr.mxu1 %v2113_v14 }
 0x179   :  { %1890 = vmatmul.mubr.msk.f32.vlgmr.msra.gmra.mxu1 %vm173_vm2, %v162_v18  ;;  %v250_v21 = vpop.permute.xlu0 %249  ;;  %v404_v30 = vpop.permute.xlu1 %403 }
 0x17a   :  { %1893 = vmatpush3.xpose.msk.msra.mxu1 %vm173_vm2, %v250_v21  ;;  %1894 = vmatprep.mubr.msk.f32.mxu1 %vm2114_vm1, %v2113_v14  ;;  %v80_v21 = vld [vmem:[#allocation7 + $0x18] sm:$0xff] }
 0x17b   :  { %1897 = vmatprep.subr.mxu1 %v2113_v14 }
 0x17d   :  { %1895 = vmatmul.mubr.msk.f32.vlgmr.msra.gmra.mxu1 %vm173_vm2, %v167_v19  ;;  %v482_v23 = vpop.permute.xlu0 %481  ;;  %v480_v32 = vpop.permute.xlu1 %479 }
 0x17e   :  { %1898 = vmatpush3.msra.mxu1 %v328_v22  ;;  %1899 = vmatprep.mubr.msk.f32.mxu1 %vm2114_vm1, %v2113_v14 }
 0x17f   :  { %1902 = vmatprep.subr.mxu1 %v2113_v14 }
 0x181   :  { %v560_v24 = vpop.permute.xlu0 %559  ;;  %v558_v34 = vpop.permute.xlu1 %557 }
 0x185   :  { %v638_v25 = vpop.permute.xlu0 %637  ;;  %v714_v35 = vpop.permute.xlu1 %713 }
 0x186   :  { %1918 = vmatpush3.msra.mxu0 %v638_v25 }
 0x187   :  { %1927 = vmatprep.subr.mxu0 %v78_v50 }
 0x189   :  { %v1032_v46 = vpop.permute.xlu1 %1031  ;;  %v954_v51 = vpop.permute.xlu0 %953 }
 0x18d   :  { %v1030_v48 = vpop.permute.xlu1 %1029  ;;  %v952_v54 = vpop.permute.xlu0 %951 }
 0x191   :  { %v1186_v49 = vpop.permute.xlu1 %1185  ;;  %v1110_v58 = vpop.permute.xlu0 %1109 }
 0x195   :  { %v1347_v62 = vpop.permute.xlu0 %1346  ;;  %v1425_v13 = vpop.permute.xlu1 %1424 }
 0x199   :  { %v1345_v63 = vpop.permute.xlu0 %1344  ;;  %v1423_v15 = vpop.permute.xlu1 %1422 }
 0x19d   :  { %v1503_v1 = vpop.permute.xlu0 %1502  ;;  %v1579_v18 = vpop.permute.xlu1 %1578 }
 0x239   :  { %v244_v26 = vpop.f32.mrf.mxu1 }
 0x23a   :  { %2006 = vtanh.f32 %v244_v26 }
 0x23b   :  { %v1891_v27 = vpop.f32.mrf.mxu1 }
 0x23d   :  { %v321_v28 = vpop.f32.mrf.mxu1 }
 0x23e   :  { %2008 = vtanh.f32 %v321_v28 }
 0x23f   :  { %v1896_v29 = vpop.f32.mrf.mxu1 }
 0x247   :  { %v2007_v31 = vpop.eup %2006 }
 0x248   :  { %1900 = vmatmul.mubr.msk.f32.vlgmr.msra.gmra.mxu1 %vm173_vm2, %v2007_v31 }
 0x249   :  { %1903 = vmatpush3.msra.mxu1 %v404_v30  ;;  %1904 = vmatprep.mubr.msk.f32.mxu1 %vm2114_vm1, %v2113_v14 }
 0x24a   :  { %1907 = vmatprep.subr.mxu1 %v2113_v14 }
 0x24b   :  { %v2009_v33 = vpop.eup %2008 }
 0x24c   :  { %1905 = vmatmul.mubr.msk.f32.vlgmr.msra.gmra.mxu1 %vm173_vm2, %v2009_v33 }
 0x24d   :  { %1908 = vmatpush3.xpose.msk.msra.mxu1 %vm173_vm2, %v482_v23  ;;  %1909 = vmatprep.mubr.msk.f32.mxu1 %vm2114_vm1, %v2113_v14 }
 0x24e   :  { %1912 = vmatprep.subr.mxu1 %v2113_v14 }
 0x250   :  { %1910 = vmatmul.mubr.msk.f32.vlgmr.msra.gmra.mxu1 %vm173_vm2, %v480_v32  ;;  %v1801_v32 = vld [vmem:[%s2273_s4] ss:$0 sm:$0xff] }
 0x251   :  { %1913 = vmatpush3.xpose.msk.msra.mxu1 %vm173_vm2, %v560_v24  ;;  %1914 = vmatprep.mubr.msk.f32.mxu1 %vm2114_vm1, %v2113_v14 }
 0x252   :  { %1922 = vmatprep.subr.mxu1 %v2113_v14 }
 0x254   :  { %1915 = vmatmul.mubr.msk.f32.vlgmr.msra.gmra.mxu1 %vm173_vm2, %v558_v34 }
 0x255   :  { %1923 = vmatpush3.msra.mxu1 %v714_v35  ;;  %1924 = vmatprep.mubr.msk.f32.mxu1 %vm2114_vm1, %v2113_v14 }
 0x256   :  { %1932 = vmatprep.subr.mxu1 %v77_v36 }
 0x308   :  { %v399_v37 = vpop.f32.mrf.mxu1 }
 0x30a   :  { %v1901_v38 = vpop.f32.mrf.mxu1 }
 0x30c   :  { %v475_v39 = vpop.f32.mrf.mxu1 }
 0x30e   :  { %v1906_v40 = vpop.f32.mrf.mxu1 }
 0x310   :  { %v553_v41 = vpop.f32.mrf.mxu1 }
 0x311   :  { %2010 = vtanh.f32 %v553_v41 }
 0x312   :  { %v1911_v42 = vpop.f32.mrf.mxu1 }
 0x314   :  { %v631_v43 = vpop.f32.mrf.mxu1 }
 0x315   :  { %2012 = vtanh.f32 %v631_v43 }
 0x316   :  { %v1916_v44 = vpop.f32.mrf.mxu1 }
 0x31e   :  { %v2011_v45 = vpop.eup %2010 }
 0x31f   :  { %1920 = vmatmul.mubr.msk.f32.vlgmr.msra.gmra.mxu0 %vm173_vm2, %v2011_v45 }
 0x320   :  { %1928 = vmatpush3.msra.mxu0 %v78_v50 }
 0x321   :  { %1937 = vmatprep.subr.mxu0 %v2113_v14 }
 0x322   :  { %v2013_v47 = vpop.eup %2012 }
 0x323   :  { %1925 = vmatmul.mubr.msk.f32.vlgmr.msra.gmra.mxu1 %vm173_vm2, %v2013_v47 }
 0x324   :  { %1934 = vmatprep.mubr.msk.f32.mxu1 %vm173_vm2, %v399_v37  ;;  %1933 = vmatpush3.msra.mxu1 %v77_v36 }
 0x325   :  { %1942 = vmatprep.subr.mxu1 %v2113_v14 }
 0x327   :  { %1935 = vmatmul.mubr.msk.f32.vlgmr.msra.gmra.mxu1 %vm173_vm2, %v475_v39 }
 0x328   :  { %1943 = vmatpush3.xpose.msk.msra.mxu1 %vm173_vm2, %v1032_v46  ;;  %1944 = vmatprep.mubr.msk.f32.mxu1 %vm2114_vm1, %v2113_v14 }
 0x329   :  { %1952 = vmatprep.subr.mxu1 %v2113_v14 }
 0x32b   :  { %1945 = vmatmul.mubr.msk.f32.vlgmr.msra.gmra.mxu1 %vm173_vm2, %v1030_v48 }
 0x32c   :  { %1953 = vmatpush3.msra.mxu1 %v1186_v49  ;;  %1954 = vmatprep.mubr.msk.f32.mxu1 %vm2114_vm1, %v2113_v14 }
 0x32d   :  { %1962 = vmatprep.subr.mxu1 %v2113_v14 }
 0x3df   :  { %v709_v52 = vpop.f32.mrf.mxu0 }
 0x3e0   :  { %1929 = vmatprep.mubr.msk.f32.mxu0 %vm173_vm2, %v709_v52 }
 0x3e1   :  { %v1921_v53 = vpop.f32.mrf.mxu0 }
 0x3e3   :  { %v785_v55 = vpop.f32.mrf.mxu1 }
 0x3e4   :  { %1930 = vmatmul.mubr.msk.f32.vlgmr.msra.gmra.mxu0 %vm173_vm2, %v785_v55 }
 0x3e5   :  { %1938 = vmatpush3.xpose.msk.msra.mxu0 %vm173_vm2, %v954_v51  ;;  %v1926_v56 = vpop.f32.mrf.mxu1  ;;  %1939 = vmatprep.mubr.msk.f32.mxu0 %vm2114_vm1, %v2113_v14 }
 0x3e6   :  { %1947 = vmatprep.subr.mxu0 %v2113_v14 }
 0x3e7   :  { %v1936_v57 = vpop.f32.mrf.mxu1 }
 0x3e8   :  { %1940 = vmatmul.mubr.msk.f32.vlgmr.msra.gmra.mxu0 %vm173_vm2, %v952_v54 }
 0x3e9   :  { %1948 = vmatpush3.msra.mxu0 %v1110_v58  ;;  %v942_v59 = vpop.f32.mrf.mxu1  ;;  %1949 = vmatprep.mubr.msk.f32.mxu0 %vm2114_vm1, %v2113_v14 }
 0x3ea   :  { %1957 = vmatprep.subr.mxu0 %v79_v2 }
 0x3eb   :  { %v1103_v60 = vpop.f32.mrf.mxu1 }
 0x3ec   :  { %2014 = vtanh.f32 %v1103_v60 }
 0x3ed   :  { %v1946_v61 = vpop.f32.mrf.mxu1 }
 0x3f9   :  { %v2015_v0 = vpop.eup %2014 }
 0x3fa   :  { %1955 = vmatmul.mubr.msk.f32.vlgmr.msra.gmra.mxu1 %vm173_vm2, %v2015_v0 }
 0x3fb   :  { %1963 = vmatpush3.xpose.msk.msra.mxu1 %vm173_vm2, %v1347_v62  ;;  %1964 = vmatprep.mubr.msk.f32.mxu1 %vm2114_vm1, %v2113_v14 }
 0x3fc   :  { %1972 = vmatprep.subr.mxu1 %v2113_v14 }
 0x3fe   :  { %1965 = vmatmul.mubr.msk.f32.vlgmr.msra.gmra.mxu1 %vm173_vm2, %v1345_v63 }
 0x3ff   :  { %1973 = vmatpush3.msra.mxu1 %v1503_v1  ;;  %1974 = vmatprep.mubr.msk.f32.mxu1 %vm2114_vm1, %v2113_v14 }
 0x400   :  { %1982 = vmatprep.subr.mxu1 %v80_v21 }
 0x4a4   :  { %v1931_v3 = vpop.f32.mrf.mxu0 }
 0x4a5   :  { %v948_v22 = vadd.f32 %v1936_v57, %v1931_v3 }
 0x4a6   :  { %v861_v4 = vpop.f32.mrf.mxu0 }
 0x4a7   :  { %v943_v24 = vadd.f32 %v942_v59, %v861_v4 }
 0x4a8   :  { %v1025_v5 = vpop.f32.mrf.mxu0 }
 0x4a9   :  { %2016 = vtanh.f32 %v1025_v5 }
 0x4aa   :  { %v1941_v6 = vpop.f32.mrf.mxu0 }
 0x4b6   :  { %v2017_v7 = vpop.eup %2016 }
 0x4b7   :  { %1950 = vmatmul.mubr.msk.f32.vlgmr.msra.gmra.mxu0 %vm173_vm2, %v2017_v7 }
 0x4b8   :  { %1958 = vmatpush3.msra.mxu0 %v79_v2 }
 0x4b9   :  { %1967 = vmatprep.subr.mxu0 %v2113_v14 }
 0x4ba   :  { %v1257_v8 = vpop.f32.mrf.mxu1 }
 0x4bc   :  { %v1956_v9 = vpop.f32.mrf.mxu1 }
 0x4be   :  { %v1418_v10 = vpop.f32.mrf.mxu1 }
 0x4bf   :  { %2018 = vtanh.f32 %v1418_v10 }
 0x4c0   :  { %v1966_v11 = vpop.f32.mrf.mxu1 }
 0x4cc   :  { %v2019_v12 = vpop.eup %2018 }
 0x4cd   :  { %1975 = vmatmul.mubr.msk.f32.vlgmr.msra.gmra.mxu1 %vm173_vm2, %v2019_v12 }
 0x4ce   :  { %1983 = vmatpush3.msra.mxu1 %v80_v21 }
 0x577   :  { %v1181_v16 = vpop.f32.mrf.mxu0 }
 0x578   :  { %1959 = vmatprep.mubr.msk.f32.mxu0 %vm173_vm2, %v1181_v16 }
 0x579   :  { %v1951_v17 = vpop.f32.mrf.mxu0  ;;  %1960 = vmatmul.mubr.msk.f32.vlgmr.msra.gmra.mxu0 %vm173_vm2, %v1257_v8 }
 0x57a   :  { %1968 = vmatpush3.xpose.msk.msra.mxu0 %vm173_vm2, %v1425_v13  ;;  %1969 = vmatprep.mubr.msk.f32.mxu0 %vm2114_vm1, %v2113_v14 }
 0x57b   :  { %1977 = vmatprep.subr.mxu0 %v2113_v14 }
 0x57d   :  { %1970 = vmatmul.mubr.msk.f32.vlgmr.msra.gmra.mxu0 %vm173_vm2, %v1423_v15 }
 0x57e   :  { %1978 = vmatpush3.msra.mxu0 %v1579_v18  ;;  %1979 = vmatprep.mubr.msk.f32.mxu0 %vm2114_vm1, %v2113_v14 }
 0x58d   :  { %v1574_v19 = vpop.f32.mrf.mxu1 }
 0x58e   :  { %1984 = vmatprep.mubr.msk.f32.mxu1 %vm173_vm2, %v1574_v19 }
 0x58f   :  { %v1976_v20 = vpop.f32.mrf.mxu1 }
 0x639   :  { %v1961_v23 = vpop.f32.mrf.mxu0 }
 0x63a   :  { %v1343_v25 = vadd.f32 %v1961_v23, %v948_v22 }
 0x63b   :  { %v1333_v26 = vpop.f32.mrf.mxu0 }
 0x63c   :  { %v1342_v27 = vadd.f32 %v1333_v26, %v943_v24 }
 0x63d   :  { %v1496_v28 = vpop.f32.mrf.mxu0 }
 0x63e   :  { %2020 = vtanh.f32 %v1496_v28 }
 0x63f   :  { %v1971_v29 = vpop.f32.mrf.mxu0 }
 0x64b   :  { %v2021_v30 = vpop.eup %2020 }
 0x64c   :  { %1980 = vmatmul.mubr.msk.f32.vlgmr.msra.gmra.mxu0 %vm173_vm2, %v2021_v30 }
 0x70c   :  { %v1650_v14 = vpop.f32.mrf.mxu0 }
 0x70d   :  { %1985 = vmatmul.mubr.msk.f32.vlgmr.msra.gmra.mxu1 %vm173_vm2, %v1650_v14 }
 0x70e   :  { %v1981_v31 = vpop.f32.mrf.mxu0 }
 0x7cd   :  { %v1986_v33 = vpop.f32.mrf.mxu1 }
 0x7ce   :  { %v1736_v34 = vadd.f32 %v1986_v33, %v1343_v25 }
 0x7cf   :  { %v1726_v35 = vpop.f32.mrf.mxu1 }
 0x7d0   :  { %v1744_v36 = vadd.f32 %v1801_v32, %v1736_v34  ;;  %v1735_v37 = vadd.f32 %v1726_v35, %v1342_v27 }
 0x7d2   :  { %v1743_v38 = vadd.f32 %v1801_v32, %v1735_v37  ;;  %1747 = vst.msk [vmem:[#allocation8 + $0x8] sm:$0xff] %vm1745_vm3, %v1744_v36 }
 0x7d4   :  { %1746 = vst.msk [vmem:[#allocation8] sm:$0xff] %vm1745_vm3, %v1743_v38 }
 0x7d5   :  { %2093 = shalt.err (!%p2090_p5)
}
 0x7d6   :  { %1759 = dma.vmem_to_hbm [thread:$0]  %s1754_s22, 256, %s2274_s5, [#allocation4], %s2110_s23, %s2110_s23, %s2111_s24  }
 0x7d7   :  { %2106 = dma.done.wait [#allocation4], 256  }
 0x7d8   :  { %2107 = vsyncadd [#allocation4], 4294967040 }
 0x7d9   :  { %1763 = vsyncpa [#allocation3], 1 }
 0x7da   :  { %1764 = vsyncpa [#allocation6], 1 }
 0x7db   :  { %1765 = vsyncpa [#allocation4], 1 }

</bundles_post_ra>
